<compile_context>
chip_gen: v7x
topology: tpu7x:2x2x1
jax: 0.10.0
libtpu: 0.0.40
codegen_flags: <defaults>
</compile_context>

<pallas_src>
import jax
import jax.numpy as jnp
from jax.experimental import pallas as pl
from jax.experimental.pallas import tpu as pltpu


# -----------------------------------------------------------------------------
# Single-instance kernel: whole arrays resident in VMEM, no grid.
# -----------------------------------------------------------------------------
def _mm_add_kernel(inp_ref, x2_ref, out_ref):
    a = inp_ref[...]
    v1 = jnp.dot(a, a, preferred_element_type=jnp.float32)
    out_ref[...] = x2_ref[...] + v1


def model_forward(x1, x2, inp):
    """Mirrors Model.forward(x1, x2, inp); x1 is unused (as in the module)."""
    del x1  # unused by the reference forward
    M, K = inp.shape
    assert K == M, "inp must be square for inp @ inp"
    assert x2.shape == (M, M), "x2 must match the matmul result shape"
    out_shape = jax.ShapeDtypeStruct((M, M), jnp.float32)
    return pl.pallas_call(
        _mm_add_kernel,
        out_shape=out_shape,
        # Whole-array VMEM residency: no grid, no pipelining machinery.
        in_specs=[
            pl.BlockSpec(memory_space=pltpu.MemorySpace.VMEM),  # inp
            pl.BlockSpec(memory_space=pltpu.MemorySpace.VMEM),  # x2
        ],
        out_specs=pl.BlockSpec(memory_space=pltpu.MemorySpace.VMEM),
        # Tell XLA this call is essentially free.
        cost_estimate=pl.CostEstimate(
            flops=2 * M * M * M,
            bytes_accessed=3 * M * M * 4,
            transcendentals=0,
        ),
    )(inp, x2)


# -----------------------------------------------------------------------------
# Batched kernel: one pallas_call for B independent (M,M) problems.
# Amortizes dispatch + per-step overhead; batch axis is "parallel" so the two
# TensorCores on v7x each take half the grid.
# -----------------------------------------------------------------------------
def _mm_add_batched_kernel(inp_ref, x2_ref, out_ref):
    a = inp_ref[0]
    v1 = jnp.dot(a, a, preferred_element_type=jnp.float32)
    out_ref[0] = x2_ref[0] + v1


def model_forward_batched(x1, x2, inp):
    """Batched variant: x2, inp have shape (B, M, M); x1 is unused."""
    del x1
    B, M, K = inp.shape
    assert K == M, "inp must be square for inp @ inp"
    assert x2.shape == (B, M, M), "x2 must match the matmul result shape"
    out_shape = jax.ShapeDtypeStruct((B, M, M), jnp.float32)
    return pl.pallas_call(
        _mm_add_batched_kernel,
        out_shape=out_shape,
        grid=(B,),
        in_specs=[
            pl.BlockSpec((1, M, M), lambda b: (b, 0, 0)),  # inp
            pl.BlockSpec((1, M, M), lambda b: (b, 0, 0)),  # x2
        ],
        out_specs=pl.BlockSpec((1, M, M), lambda b: (b, 0, 0)),
        compiler_params=pltpu.CompilerParams(
            dimension_semantics=("parallel",),
        ),
        cost_estimate=pl.CostEstimate(
            flops=2 * B * M * M * M,
            bytes_accessed=3 * B * M * M * 4,
            transcendentals=0,
        ),
    )(inp, x2)


if __name__ == "__main__":
    key = jax.random.PRNGKey(0)
    k1, k2, k3, k4, k5 = jax.random.split(key, 5)

    M = 12
    inp = jax.random.normal(k1, (M, M), dtype=jnp.float32)
    x2 = jax.random.normal(k2, (M, M), dtype=jnp.float32)
    x1 = jax.random.normal(k3, (M, M), dtype=jnp.float32)  # unused, per module

    # ---- single-instance path (matches Model.forward semantics) ----
    ref = x2 + inp @ inp
    out = model_forward(x1, x2, inp)
    out = jax.block_until_ready(out)
    assert out.shape == (M, M)
    assert jnp.allclose(out, ref, atol=1e-4, rtol=1e-4)

    # ---- batched path (amortized dispatch; same per-instance math) ----
    B = 8
    inp_b = jax.random.normal(k4, (B, M, M), dtype=jnp.float32)
    x2_b = jax.random.normal(k5, (B, M, M), dtype=jnp.float32)
    ref_b = x2_b + jnp.einsum("bij,bjk->bik", inp_b, inp_b)
    out_b = model_forward_batched(None, x2_b, inp_b)
    out_b = jax.block_until_ready(out_b)
    assert out_b.shape == (B, M, M)
    assert jnp.allclose(out_b, ref_b, atol=1e-4, rtol=1e-4)

    print("KERNEL_OK")
</pallas_src>

<mosaic_0001>
module attributes {stable_mosaic.version = 11 : i64} {
  func.func @_mm_add_kernel(%arg0: memref<12x12xf32, #tpu.memory_space<vmem>>, %arg1: memref<12x12xf32, #tpu.memory_space<vmem>>, %arg2: memref<12x12xf32, #tpu.memory_space<vmem>>) attributes {dimension_semantics = [], scalar_prefetch = 0 : i64, scratch_operands = 0 : i64, tpu.core_type = #tpu.core_type<tc>} {
    %c0 = arith.constant 0 : index
    %c0_0 = arith.constant 0 : index
    %0 = vector.load %arg0[%c0, %c0_0] : memref<12x12xf32, #tpu.memory_space<vmem>>, vector<12x12xf32>
    %cst = arith.constant dense<0.000000e+00> : vector<12x12xf32>
    %1 = tpu.matmul %0, %0, %cst {dimension_numbers = #tpu.dot_dimension_numbers<[1], [0], [0], [1], [0, 0, 1, 1], [], []>} : vector<12x12xf32>, vector<12x12xf32>, vector<12x12xf32> -> vector<12x12xf32>
    %c0_1 = arith.constant 0 : index
    %c0_2 = arith.constant 0 : index
    %2 = vector.load %arg1[%c0_1, %c0_2] : memref<12x12xf32, #tpu.memory_space<vmem>>, vector<12x12xf32>
    %3 = arith.addf %2, %1 : vector<12x12xf32>
    %c0_3 = arith.constant 0 : index
    %c0_4 = arith.constant 0 : index
    %4 = vector.load %arg2[%c0_3, %c0_4] : memref<12x12xf32, #tpu.memory_space<vmem>>, vector<12x12xf32>
    tpu.vector_store %arg2[%c0_3, %c0_4], %3 {strides = array<i32>} : memref<12x12xf32, #tpu.memory_space<vmem>>, vector<12x12xf32>,
    return
  }
}

</mosaic_0001>

<bundles_post_ra>
// kernel: tpu_custom_call.1
= control target key start
LH: loop header
LB: loop body
LE: loop exit
PB: predicated region body
PF: predicated region fallthrough
CT: control target
= control target key end

     0   :  { %7 = vsyncpa [#allocation3], 0  ;;  %s319_s0 = inlined_call_operand.hbm [shape: f32[12,12], index: 0, kind: input, shape index: {}]   ;;  %s320_s1 = inlined_call_operand.hbm [shape: f32[12,12], index: 1, kind: input, shape index: {}]   ;;  %s321_s2 = inlined_call_operand.hbm [shape: f32[12,12], index: 2, kind: output, shape index: {}]  }
   0x1   :  { %8 = vsyncpa [#allocation6], 0 }
   0x2   :  { %9 = vsyncpa [#allocation4], 0  ;;  %s250_s9 = smov [#allocation2]   ;;  %s178_s13 = scalar_lea.hbm %s319_s0, 256 }
   0x3   :  { %s15_s10 = sshll.u32 %s250_s9, 4  ;;  %p179_p0 = scmp.ne.s32.totalorder %s319_s0, %s178_s13  ;;  %s16_s10 = int_to_ptr.vmem [resolvable:$true] %s15_s10 }
   0x4   :  { %p182_p1 = scmp.lt.u32.totalorder %s178_s13, %s319_s0 }
   0x6   :  { %p184_p2 = pnand %p182_p1, %p179_p0 }
   0x8   :  { %187 = shalt.err (!%p184_p2)
}
   0x9   :  { %s188_s18 = scalar_lea.vmem %s16_s10, 256  ;;  %p193_p4 = scmp.lt.s32.totalorder %s16_s10, %s16_s10 }
   0xa   :  { %p189_p3 = scmp.ne.s32.totalorder %s16_s10, %s188_s18  ;;  %p194_p5 = scmp.lt.s32.totalorder %s188_s18, %s188_s18 }
   0xc   :  { %p195_p6 = por %p194_p5, %p193_p4 }
   0xe   :  { %p196_p7 = pnand %p195_p6, %p189_p3 }
  0x10   :  { %199 = shalt.err (!%p196_p7)
}
  0x11   :  { %s251_s19 = smov 128   ;;  %s252_s20 = smov 8  }
  0x12   :  { %21 = dma.hbm_to_vmem [thread:$0]  %s319_s0, 256, %s16_s10, [#allocation3], %s251_s19, %s251_s19, %s252_s20  }
  0x13   :  { %s253_s23 = smov [#allocation5]   ;;  %s200_s27 = scalar_lea.hbm %s320_s1, 256 }
  0x14   :  { %s27_s24 = sshll.u32 %s253_s23, 4  ;;  %p201_p8 = scmp.ne.s32.totalorder %s320_s1, %s200_s27  ;;  %s28_s24 = int_to_ptr.vmem [resolvable:$true] %s27_s24 }
  0x15   :  { %p204_p9 = scmp.lt.u32.totalorder %s200_s27, %s320_s1 }
  0x17   :  { %p206_p10 = pnand %p204_p9, %p201_p8 }
  0x19   :  { %209 = shalt.err (!%p206_p10)
}
  0x1a   :  { %s210_s4 = scalar_lea.vmem %s28_s24, 256  ;;  %p215_p12 = scmp.lt.s32.totalorder %s28_s24, %s28_s24 }
  0x1b   :  { %p211_p11 = scmp.ne.s32.totalorder %s28_s24, %s210_s4  ;;  %p216_p13 = scmp.lt.s32.totalorder %s210_s4, %s210_s4 }
  0x1d   :  { %p217_p0 = por %p216_p13, %p215_p12 }
  0x1f   :  { %p218_p1 = pnand %p217_p0, %p211_p11 }
  0x21   :  { %221 = shalt.err (!%p218_p1)
}
  0x22   :  { %33 = dma.hbm_to_vmem [thread:$0]  %s320_s1, 256, %s28_s24, [#allocation6], %s251_s19, %s251_s19, %s252_s20  }
  0x23   :  { %244 = dma.done.wait [#allocation3], 256  }
  0x24   :  { %245 = vsyncadd [#allocation3], 4294967040 }
  0x25   :  { %246 = dma.done.wait [#allocation6], 256  }
  0x26   :  { %247 = vsyncadd [#allocation6], 4294967040  ;;  %vm49_vm0 = vcmask 1043456   ;;  %vm42_vm1 = vcmask 97280   ;;  %v40_v0 = vld [vmem:[#allocation2] sm:$0xff]  ;;  %vm254_vm2 = vmmov 1  }
  0x27   :  { %v41_v1 = vld [vmem:[#allocation2 + $0x8] sm:$0xf]  ;;  %vm167_vm3 = vmpackc.low %vm49_vm0, %vm254_vm2  ;;  %163 = vmatprep.mubr.msk.f32.mxu0 %vm42_vm1, %v40_v0  ;;  %v128_v3 = vld [vmem:[#allocation5 + $0x8] sm:$0xf]  ;;  %s255_s1 = smov [#allocation7]   ;;  %vm132_vm4 = vcmask 93184  }
  0x28   :  { %v166_v2 = vpack.c.bf16 %v41_v1, %v40_v0  ;;  %v127_v4 = vld [vmem:[#allocation5] sm:$0xff]  ;;  %s139_s6 = sshll.u32 %s255_s1, 4  ;;  %s140_s6 = int_to_ptr.vmem [resolvable:$true] %s139_s6 }
  0x29   :  { %s222_s7 = scalar_lea.vmem %s140_s6, 256  ;;  %p227_p3 = scmp.lt.s32.totalorder %s140_s6, %s140_s6 }
  0x2a   :  { %168 = vmatprep.subr.msk.bf16.mxu0 %vm167_vm3, %v166_v2  ;;  %p223_p2 = scmp.ne.s32.totalorder %s140_s6, %s222_s7  ;;  %p228_p4 = scmp.lt.s32.totalorder %s222_s7, %s222_s7 }
  0x2b   :  { %171 = vmatpush3.bf16.msk.msra.mxu0 %vm167_vm3, %v166_v2 }
  0x2c   :  { %p229_p5 = por %p228_p4, %p227_p3 }
  0x2e   :  { %164 = vmatmul.mubr.msk.f32.vlgmr.msra.gmra.mrb[0].mxu0 %vm42_vm1, %v41_v1  ;;  %p230_p6 = pnand %p229_p5, %p223_p2 }
 0x101   :  { %v165_v5 = vpop.f32.mrb[0].mxu0 }
 0x102   :  { %v130_v6 = vadd.f32 %v165_v5, %v128_v3  ;;  %v118_v7 = vpop.f32.mrb[1].mxu0 }
 0x103   :  { %v129_v8 = vadd.f32 %v127_v4, %v118_v7 }
 0x104   :  { %133 = vst.msk [vmem:[#allocation7 + $0x8] sm:$0xf] %vm132_vm4, %v130_v6 }
 0x105   :  { %131 = vst.msk [vmem:[#allocation7] sm:$0xff] %vm42_vm1, %v129_v8 }
 0x106   :  { %233 = shalt.err (!%p230_p6)
}
 0x107   :  { %s234_s10 = scalar_lea.hbm %s321_s2, 256 }
 0x108   :  { %p235_p7 = scmp.ne.s32.totalorder %s321_s2, %s234_s10  ;;  %p238_p8 = scmp.lt.u32.totalorder %s234_s10, %s321_s2 }
 0x10a   :  { %p240_p9 = pnand %p238_p8, %p235_p7 }
 0x10c   :  { %243 = shalt.err (!%p240_p9)
}
 0x10d   :  { %145 = dma.vmem_to_hbm [thread:$0]  %s140_s6, 256, %s321_s2, [#allocation4], %s251_s19, %s251_s19, %s252_s20  }
 0x10e   :  { %248 = dma.done.wait [#allocation4], 256  }
 0x10f   :  { %249 = vsyncadd [#allocation4], 4294967040 }
 0x110   :  { %149 = vsyncpa [#allocation3], 1 }
 0x111   :  { %150 = vsyncpa [#allocation6], 1 }
 0x112   :  { %151 = vsyncpa [#allocation4], 1 }

</bundles_post_ra>
